<compile_context>
chip_gen: v7x
topology: tpu7x:2x2x1
jax: 0.10.0
libtpu: 0.0.40
codegen_flags: <defaults>
</compile_context>

<pallas_src>
import functools

import jax
import jax.numpy as jnp
from jax.experimental import pallas as pl
from jax.experimental.pallas import tpu as pltpu


def _pick_tile_c(n_cls, n_ctx, D, itemsize, target_bytes=8 << 20):
    """Classes per grid step: ~8 MiB slabs, preferring exact divisors of n_cls."""
    per_class = max(n_ctx * D * itemsize, 1)
    cap = int(max(1, min(n_cls, target_bytes // per_class)))
    best_div = 1
    for d in range(1, cap + 1):
        if n_cls % d == 0:
            best_div = d
    if 2 * best_div >= cap:       # divisor is close enough to the byte target
        return best_div
    return cap                    # fall back: last block is clamped (overlaps)


@functools.partial(jax.jit, static_argnames=("n_ctx", "tile_c"), donate_argnums=(0,))
def prompt_learner_forward(embedding, ctx, *, n_ctx, tile_c=None):
    """prompts = cat([embedding[:, :1], ctx, embedding[:, 1+n_ctx:]], axis=1).

    embedding : (n_cls, L, D) full token embedding of the tokenized prompts
                (rows 1 : 1+n_ctx hold the placeholder 'X' tokens and are
                 overwritten in place through output aliasing).
    ctx       : (n_ctx, D)    learnable generic context vectors.
    returns   : (n_cls, L, D) prompts.

    NOTE: `embedding` is DONATED (jit donate_argnums=(0,)), so the in-place
    aliasing is honored and the caller must not reuse `embedding` afterwards.
    """
    n_cls, L, D = embedding.shape
    assert ctx.shape == (n_ctx, D)
    assert L >= 1 + n_ctx
    out_dtype = embedding.dtype
    ctx = ctx.astype(out_dtype)                      # cast once, outside the kernel

    if tile_c is None:
        tile_c = _pick_tile_c(n_cls, n_ctx, D, jnp.dtype(out_dtype).itemsize)
    tile_c = max(1, min(int(tile_c), n_cls))
    num_blocks = int(pl.cdiv(n_cls, tile_c))
    has_remainder = (n_cls % tile_c) != 0

    def kernel(emb_hbm, ctx_ref, out_hbm, ctx_buf, copy_sem):
        # emb_hbm is aliased with out_hbm (same HBM buffer): prefix and suffix
        # rows are already in place, so the embedding is never read here.
        del emb_hbm
        i = pl.program_id(0)
        slot = i % 2
        prev_slot = 1 - slot

        def dma(c_start, s):
            # One wide strided DMA: write ONLY the ctx rows of a class block.
            return pltpu.make_async_copy(
                ctx_buf,
                out_hbm.at[pl.ds(c_start, tile_c), pl.ds(1, n_ctx), :],
                copy_sem.at[s],
            )

        # Broadcast the shared context across the class tile ONCE. The grid
        # axis is "arbitrary" (sequential on one core), so the scratch slab
        # persists and all later steps DMA from this same read-only buffer.
        @pl.when(i == 0)
        def _():
            ctx_buf[...] = jnp.broadcast_to(ctx_ref[...], (tile_c, n_ctx, D))

        # Pipeline depth 2: before reusing this semaphore slot, drain the DMA
        # issued two steps ago on it (the DMA from step i-1 stays in flight).
        @pl.when(i >= 2)
        def _():
            dma(0, slot).wait()

        c_start = i * tile_c
        if has_remainder:
            # Clamp so the last (partial) block stays in range; it then overlaps
            # the previous block's rows, so drain the previous DMA first to avoid
            # two in-flight DMAs writing the same HBM rows.
            c_start = jnp.minimum(c_start, n_cls - tile_c)
            if num_blocks >= 2:
                @pl.when(i == num_blocks - 1)
                def _():
                    dma(0, prev_slot).wait()

        dma(c_start, slot).start()

        # Drain every still-outstanding DMA on the final step.
        @pl.when(i == num_blocks - 1)
        def _():
            dma(0, slot).wait()
            if (not has_remainder) and num_blocks >= 2:
                dma(0, prev_slot).wait()

    return pl.pallas_call(
        kernel,
        out_shape=jax.ShapeDtypeStruct((n_cls, L, D), out_dtype),
        grid_spec=pltpu.PrefetchScalarGridSpec(
            num_scalar_prefetch=0,
            grid=(num_blocks,),
            in_specs=[
                # Full embedding stays in HBM (no auto-DMA); aliased with output.
                pl.BlockSpec(memory_space=pl.ANY),
                # Shared context: constant block index -> fetched into VMEM once.
                pl.BlockSpec((n_ctx, D), lambda i: (0, 0)),
            ],
            out_specs=pl.BlockSpec(memory_space=pl.ANY),
            scratch_shapes=[
                pltpu.VMEM((tile_c, n_ctx, D), out_dtype),   # broadcast ctx slab
                pltpu.SemaphoreType.DMA((2,)),               # 2 in-flight DMAs
            ],
        ),
        # Output buffer re-uses the embedding buffer: only ctx rows are written.
        input_output_aliases={0: 0},
        compiler_params=pltpu.CompilerParams(
            # Sequential grid on one core: needed so the one-time ctx broadcast
            # and the cross-step DMA pipeline/drain are well defined. A single
            # TC's DMA engines saturate HBM write BW for this copy kernel.
            dimension_semantics=("arbitrary",),
        ),
    )(embedding, ctx)


if __name__ == "__main__":
    # Small deterministic setup consistent with PromptLearner.__init__
    # (CSC=False generic context, CLASS_TOKEN_POSITION='end'):
    #   n_cls classes, n_ctx context tokens, tokenized length L, embedding dim D
    #   (D kept a multiple of 128 -> lane-dense stores/DMAs).
    n_cls, n_ctx, L, D = 16, 8, 16, 128

    key = jax.random.PRNGKey(0)
    k_ctx, k_emb = jax.random.split(key)

    # nn.init.normal_(ctx_vectors, std=0.02)  (generic context)
    ctx = (0.02 * jax.random.normal(k_ctx, (n_ctx, D))).astype(jnp.float32)
    # clip_model.token_embedding(tokenized_prompts) stand-in: (n_cls, L, D);
    # rows 1 : 1+n_ctx hold the 'X X X ...' placeholder embeddings.
    embedding = jax.random.normal(k_emb, (n_cls, L, D)).astype(jnp.float32)

    # Pure-JAX reference, built (and materialized) BEFORE the call because the
    # embedding buffer is donated / clobbered in place by the kernel.
    token_prefix = embedding[:, :1, :]
    token_suffix = embedding[:, 1 + n_ctx:, :]
    ctx_b = jnp.broadcast_to(ctx[None, :, :], (n_cls, n_ctx, D))
    ref = jnp.concatenate([token_prefix, ctx_b, token_suffix], axis=1)
    ref = jax.block_until_ready(ref)

    prompts = prompt_learner_forward(embedding, ctx, n_ctx=n_ctx)
    prompts = jax.block_until_ready(prompts)

    assert prompts.shape == (n_cls, L, D)
    assert jnp.array_equal(prompts, ref), "mismatch vs reference concat"

    print("KERNEL_OK")
</pallas_src>

<mosaic_0001>
module attributes {stable_mosaic.version = 11 : i64} {
  func.func @kernel(%arg0: i32, %arg1: memref<16x16x128xf32, #tpu.memory_space<any>>, %arg2: memref<8x128xf32, #tpu.memory_space<vmem>>, %arg3: memref<16x16x128xf32, #tpu.memory_space<any>>, %arg4: memref<16x8x128xf32, #tpu.memory_space<vmem>>, %arg5: memref<2x!tpu.dma_semaphore, #tpu.memory_space<semaphore_mem>>) attributes {dimension_semantics = [#tpu.dimension_semantics<arbitrary>], iteration_bounds = array<i64: 1>, scalar_prefetch = 0 : i64, scratch_operands = 2 : i64, tpu.core_type = #tpu.core_type<tc>, window_params = [{}, {pipeline_mode = #tpu.pipeline_mode<synchronous>, transform_indices = @transform_1, window_bounds = array<i64: 8, 128>}, {}]} {
    %c2_i32 = arith.constant 2 : i32
    %c0_i32 = arith.constant 0 : i32
    %0 = arith.cmpi eq, %c2_i32, %c0_i32 : i32
    %c1_i32 = arith.constant 1 : i32
    %1 = arith.select %0, %c1_i32, %c2_i32 : i32
    %2 = arith.remsi %arg0, %1 : i32
    %c0_i32_0 = arith.constant 0 : i32
    %3 = arith.cmpi ne, %2, %c0_i32_0 : i32
    %c0_i32_1 = arith.constant 0 : i32
    %4 = arith.cmpi slt, %2, %c0_i32_1 : i32
    %c0_i32_2 = arith.constant 0 : i32
    %5 = arith.cmpi slt, %1, %c0_i32_2 : i32
    %6 = arith.xori %4, %5 : i1
    %7 = arith.andi %6, %3 : i1
    %8 = arith.addi %2, %1 : i32
    %9 = arith.select %7, %8, %2 : i32
    %c0_i32_3 = arith.constant 0 : i32
    %10 = arith.cmpi eq, %arg0, %c0_i32_3 : i32
    %11 = arith.extui %10 : i1 to i32
    %c0_i32_4 = arith.constant 0 : i32
    %12 = arith.cmpi ne, %11, %c0_i32_4 : i32
    scf.if %12 {
      %c0 = arith.constant 0 : index
      %c0_11 = arith.constant 0 : index
      %23 = vector.load %arg2[%c0, %c0_11] : memref<8x128xf32, #tpu.memory_space<vmem>>, vector<8x128xf32>
      %24 = vector.shape_cast %23 : vector<8x128xf32> to vector<1x8x128xf32>
      %25 = vector.broadcast %24 : vector<1x8x128xf32> to vector<16x8x128xf32>
      %c0_12 = arith.constant 0 : index
      %c0_13 = arith.constant 0 : index
      %c0_14 = arith.constant 0 : index
      %26 = vector.load %arg4[%c0_12, %c0_13, %c0_14] : memref<16x8x128xf32, #tpu.memory_space<vmem>>, vector<16x8x128xf32>
      tpu.vector_store %arg4[%c0_12, %c0_13, %c0_14], %25 {strides = array<i32>} : memref<16x8x128xf32, #tpu.memory_space<vmem>>, vector<16x8x128xf32>,
    } else {
    }
    %c2_i32_5 = arith.constant 2 : i32
    %13 = arith.cmpi sge, %arg0, %c2_i32_5 : i32
    %14 = arith.extui %13 : i1 to i32
    %c0_i32_6 = arith.constant 0 : i32
    %15 = arith.cmpi ne, %14, %c0_i32_6 : i32
    scf.if %15 {
      %c0_i32_11 = arith.constant 0 : i32
      %c1_i32_12 = arith.constant 1 : i32
      %c0_i32_13 = arith.constant 0 : i32
      %23 = tpu.memref_slice %arg3[%c0_i32_11, %c1_i32_12, %c0_i32_13] : memref<16x16x128xf32, #tpu.memory_space<any>> -> memref<16x8x128xf32, #tpu.memory_space<any>>
      %24 = tpu.memref_slice %arg5[%9] : memref<2x!tpu.dma_semaphore, #tpu.memory_space<semaphore_mem>> -> memref<1x!tpu.dma_semaphore, #tpu.memory_space<semaphore_mem>>
      %25 = tpu.memref_squeeze %24 : memref<1x!tpu.dma_semaphore, #tpu.memory_space<semaphore_mem>> -> memref<!tpu.dma_semaphore, #tpu.memory_space<semaphore_mem>>
      tpu.wait_dma2 semaphore(%25 : memref<!tpu.dma_semaphore, #tpu.memory_space<semaphore_mem>>) src(%arg4 : memref<16x8x128xf32, #tpu.memory_space<vmem>>) dst(%23 : memref<16x8x128xf32, #tpu.memory_space<any>>)
    } else {
    }
    %c16_i32 = arith.constant 16 : i32
    %16 = arith.muli %arg0, %c16_i32 : i32
    %c1_i32_7 = arith.constant 1 : i32
    %c0_i32_8 = arith.constant 0 : i32
    %17 = tpu.memref_slice %arg3[%16, %c1_i32_7, %c0_i32_8] : memref<16x16x128xf32, #tpu.memory_space<any>> -> memref<16x8x128xf32, #tpu.memory_space<any>>
    %18 = tpu.memref_slice %arg5[%9] : memref<2x!tpu.dma_semaphore, #tpu.memory_space<semaphore_mem>> -> memref<1x!tpu.dma_semaphore, #tpu.memory_space<semaphore_mem>>
    %19 = tpu.memref_squeeze %18 : memref<1x!tpu.dma_semaphore, #tpu.memory_space<semaphore_mem>> -> memref<!tpu.dma_semaphore, #tpu.memory_space<semaphore_mem>>
    tpu.enqueue_dma source(%arg4 : memref<16x8x128xf32, #tpu.memory_space<vmem>>) target(%17 : memref<16x8x128xf32, #tpu.memory_space<any>>) target_semaphore(%19 : memref<!tpu.dma_semaphore, #tpu.memory_space<semaphore_mem>>)
    %c0_i32_9 = arith.constant 0 : i32
    %20 = arith.cmpi eq, %arg0, %c0_i32_9 : i32
    %21 = arith.extui %20 : i1 to i32
    %c0_i32_10 = arith.constant 0 : i32
    %22 = arith.cmpi ne, %21, %c0_i32_10 : i32
    scf.if %22 {
      %c0_i32_11 = arith.constant 0 : i32
      %c1_i32_12 = arith.constant 1 : i32
      %c0_i32_13 = arith.constant 0 : i32
      %23 = tpu.memref_slice %arg3[%c0_i32_11, %c1_i32_12, %c0_i32_13] : memref<16x16x128xf32, #tpu.memory_space<any>> -> memref<16x8x128xf32, #tpu.memory_space<any>>
      %24 = tpu.memref_slice %arg5[%9] : memref<2x!tpu.dma_semaphore, #tpu.memory_space<semaphore_mem>> -> memref<1x!tpu.dma_semaphore, #tpu.memory_space<semaphore_mem>>
      %25 = tpu.memref_squeeze %24 : memref<1x!tpu.dma_semaphore, #tpu.memory_space<semaphore_mem>> -> memref<!tpu.dma_semaphore, #tpu.memory_space<semaphore_mem>>
      tpu.wait_dma2 semaphore(%25 : memref<!tpu.dma_semaphore, #tpu.memory_space<semaphore_mem>>) src(%arg4 : memref<16x8x128xf32, #tpu.memory_space<vmem>>) dst(%23 : memref<16x8x128xf32, #tpu.memory_space<any>>)
    } else {
    }
    return
  }
  func.func @transform_1(%arg0: i32) -> (i32, i32) {
    %c0_i32 = arith.constant 0 : i32
    %c0_i32_0 = arith.constant 0 : i32
    %c0_i32_1 = arith.constant 0 : i32
    return %c0_i32, %c0_i32_0 : i32, i32
  }
}

</mosaic_0001>

<bundles_post_ra>
// kernel: prompt_learner_forward.1
= control target key start
LH: loop header
LB: loop body
LE: loop exit
PB: predicated region body
PF: predicated region fallthrough
CT: control target
= control target key end

     0   :  { %7 = vsyncpa [#allocation5], 0  ;;  %s152_s9 = smov [#allocation4]   ;;  %s209_s0 = inlined_call_operand.hbm [shape: f32[16,16,128], index: 0, kind: input, shape index: {}, may-alias: {0,2}]   ;;  %s210_s1 = inlined_call_operand.hbm [shape: f32[8,128], index: 1, kind: input, shape index: {}]   ;;  %s211_s2 = inlined_call_operand.hbm [shape: f32[16,16,128], index: 2, kind: output, shape index: {}, may-alias: {0,2}]  }
   0x1   :  { %s14_s10 = sshll.u32 %s152_s9, 4  ;;  %s101_s13 = scalar_lea.hbm %s210_s1, 128  ;;  %s15_s10 = int_to_ptr.vmem [resolvable:$true] %s14_s10 }
   0x2   :  { %p102_p0 = scmp.ne.s32.totalorder %s210_s1, %s101_s13  ;;  %p105_p1 = scmp.lt.u32.totalorder %s101_s13, %s210_s1 }
   0x4   :  { %p107_p2 = pnand %p105_p1, %p102_p0 }
   0x6   :  { %110 = shalt.err (!%p107_p2)
}
   0x7   :  { %s111_s17 = scalar_lea.vmem %s15_s10, 128  ;;  %p116_p4 = scmp.lt.s32.totalorder %s15_s10, %s15_s10 }
   0x8   :  { %p112_p3 = scmp.ne.s32.totalorder %s15_s10, %s111_s17  ;;  %p117_p5 = scmp.lt.s32.totalorder %s111_s17, %s111_s17 }
   0xa   :  { %p118_p6 = por %p117_p5, %p116_p4 }
   0xc   :  { %p119_p7 = pnand %p118_p6, %p112_p3 }
   0xe   :  { %122 = shalt.err (!%p119_p7)
}
   0xf   :  { %17 = dma.hbm_to_vmem [thread:$0]  %s210_s1, 128, %s15_s10, [#allocation5]  }
  0x10   :  { %148 = dma.done.wait [#allocation5], 128  }
  0x11   :  { %149 = vsyncadd [#allocation5], 4294967168  ;;  %s153_s20 = smov [#allocation2]   ;;  %s187_s24 = scalar_lea.hbm %s211_s2, 16  ;;  %v33_v0 = vld [vmem:[#allocation4] sm:$0xff] }
  0x12   :  { %s66_s21 = sshll.u32 %s153_s20, 4  ;;  %34 = vst [vmem:[#allocation2] sm:$0xff] %v33_v0  ;;  %35 = vst [vmem:[#allocation2 + $0x8] sm:$0xff] %v33_v0  ;;  %s189_s21 = int_to_ptr.vmem [resolvable:$true] %s66_s21 }
  0x13   :  { %36 = vst [vmem:[#allocation2 + $0x10] sm:$0xff] %v33_v0  ;;  %37 = vst [vmem:[#allocation2 + $0x18] sm:$0xff] %v33_v0  ;;  %s123_s1 = scalar_lea.vmem %s189_s21, 2048  ;;  %p128_p9 = scmp.lt.s32.totalorder %s189_s21, %s189_s21 }
  0x14   :  { %38 = vst [vmem:[#allocation2 + $0x20] sm:$0xff] %v33_v0  ;;  %39 = vst [vmem:[#allocation2 + $0x28] sm:$0xff] %v33_v0  ;;  %p124_p8 = scmp.ne.s32.totalorder %s189_s21, %s123_s1  ;;  %p129_p10 = scmp.lt.s32.totalorder %s123_s1, %s123_s1 }
  0x15   :  { %40 = vst [vmem:[#allocation2 + $0x30] sm:$0xff] %v33_v0  ;;  %41 = vst [vmem:[#allocation2 + $0x38] sm:$0xff] %v33_v0 }
  0x16   :  { %42 = vst [vmem:[#allocation2 + $0x40] sm:$0xff] %v33_v0  ;;  %43 = vst [vmem:[#allocation2 + $0x48] sm:$0xff] %v33_v0  ;;  %p130_p11 = por %p129_p10, %p128_p9 }
  0x17   :  { %44 = vst [vmem:[#allocation2 + $0x50] sm:$0xff] %v33_v0  ;;  %45 = vst [vmem:[#allocation2 + $0x58] sm:$0xff] %v33_v0 }
  0x18   :  { %46 = vst [vmem:[#allocation2 + $0x60] sm:$0xff] %v33_v0  ;;  %47 = vst [vmem:[#allocation2 + $0x68] sm:$0xff] %v33_v0  ;;  %p131_p12 = pnand %p130_p11, %p124_p8 }
  0x19   :  { %48 = vst [vmem:[#allocation2 + $0x70] sm:$0xff] %v33_v0  ;;  %49 = vst [vmem:[#allocation2 + $0x78] sm:$0xff] %v33_v0 }
  0x1a   :  { %134 = shalt.err (!%p131_p12)  }
  0x1b   :  { %s147_s27 = scalar_lea.hbm %s211_s2, 2064  ;;  %s137_s30 = scalar_lea.hbm %s211_s2, 4096 }
  0x1c   :  { %p136_p13 = scmp.ne.s32.totalorder %s187_s24, %s147_s27  ;;  %p138_p0 = scmp.lt.u32.totalorder %s187_s24, %s211_s2 }
  0x1d   :  { %p139_p1 = scmp.lt.u32.totalorder %s137_s30, %s147_s27  ;;  %p141_p3 = scmp.lt.u32.totalorder %s147_s27, %s187_s24 }
  0x1f   :  { %p140_p2 = por %p139_p1, %p138_p0 }
  0x21   :  { %p142_p4 = por %p141_p3, %p140_p2 }
  0x23   :  { %p143_p5 = pnand %p142_p4, %p136_p13 }
  0x25   :  { %146 = shalt.err (!%p143_p5)  }
  0x26   :  { %s154_s5 = smov 128   ;;  %s155_s6 = smov 256  }
  0x27   :  { %s156_s7 = smov 8  }
  0x28   :  { %69 = dma.vmem_to_hbm [thread:$0]  %s189_s21, 2048, %s187_s24, [#allocation3], %s154_s5, %s155_s6, %s156_s7 }
  0x29   :  { %150 = dma.done.wait [#allocation3], 2048 }
  0x2a   :  { %151 = vsyncadd [#allocation3], 4294965248 }
  0x2b   :  { %77 = vsyncpa [#allocation5], 1 }
  0x2c   :  { %78 = vsyncmov [#allocation3] }
  0x2f   :  { %s79_s8 = vpop.sfrf %78 }
  0x30   :  { %p94_p6 = scmp.ne.s32.totalorder %s79_s8, 0 }
  0x32   :  { %83 = shalt.err (%p94_p6)  }
  0x33   :  { %85 = vsyncmov [#allocation3 + $0x1] }
  0x36   :  { %s86_s2 = vpop.sfrf %85 }
  0x37   :  { %p95_p7 = scmp.ne.s32.totalorder %s86_s2, 0 }
  0x39   :  { %90 = shalt.err (%p95_p7)  }

</bundles_post_ra>
